<compile_context>
chip_gen: v6e
topology: v6e:2x2x1
jax: 0.10.0
libtpu: 0.0.40
codegen_flags: <defaults>
</compile_context>

<pallas_src>
import functools

import jax
import jax.numpy as jnp
from jax.experimental import pallas as pl
from jax.experimental.pallas import tpu as pltpu


IN_FEATURES = 24
H1 = 24
H2 = 14
OUT_FEATURES = 8


def mlp_kernel(x_ref, w1_ref, b1_ref, w2_ref, b2_ref, w3_ref, b3_ref, o_ref):
    # Whole (tiny) MLP forward for one batch tile, fully in VMEM/vregs.
    x = x_ref[...]                                                    # (tb, 24)

    h1 = jnp.dot(x, w1_ref[...], preferred_element_type=jnp.float32) + b1_ref[...]
    h1 = jnp.maximum(h1, 0.0)                                         # ReLU

    h2 = jnp.dot(h1, w2_ref[...], preferred_element_type=jnp.float32) + b2_ref[...]
    h2 = jnp.maximum(h2, 0.0)                                         # ReLU

    h3 = jnp.dot(h2, w3_ref[...], preferred_element_type=jnp.float32) + b3_ref[...]
    o_ref[...] = h3.astype(o_ref.dtype)                               # (tb, 8) dense


@functools.partial(jax.jit, static_argnames=("tb",))
def mlp_forward(x, params, *, tb=1024):
    """x: (B, 24) float32; params: dict of pre-transposed weights + biases."""
    B, F = x.shape

    # Cap the tile so the grid keeps >= 2 steps (v7x megacore split over the
    # "parallel" batch axis) and round to a multiple of 8 (sublane).
    half = -(-B // 2)                       # cdiv(B, 2)
    half8 = max(8, -(-half // 8) * 8)       # round up to multiple of 8
    tb = int(max(8, min(tb, half8)))
    nb = pl.cdiv(B, tb)                     # ragged last tile: OOB writes masked

    w1, b1 = params["w1"], params["b1"]
    w2, b2 = params["w2"], params["b2"]
    w3, b3 = params["w3"], params["b3"]

    # Weights/biases: full-array blocks with a constant block index -> fetched
    # once, VMEM-resident for the whole grid.
    def resident(a):
        return pl.BlockSpec(a.shape, lambda i: (0, 0))

    flops = 2 * B * (IN_FEATURES * H1 + H1 * H2 + H2 * OUT_FEATURES)
    param_bytes = sum(int(p.size) * 4 for p in (w1, b1, w2, b2, w3, b3))
    bytes_accessed = B * (IN_FEATURES + OUT_FEATURES) * 4 + param_bytes

    return pl.pallas_call(
        mlp_kernel,
        out_shape=jax.ShapeDtypeStruct((B, OUT_FEATURES), jnp.float32),
        grid_spec=pltpu.PrefetchScalarGridSpec(
            num_scalar_prefetch=0,
            grid=(nb,),
            in_specs=[
                pl.BlockSpec((tb, F), lambda i: (i, 0)),   # x: batch-tiled
                resident(w1), resident(b1),
                resident(w2), resident(b2),
                resident(w3), resident(b3),
            ],
            out_specs=pl.BlockSpec((tb, OUT_FEATURES), lambda i: (i, 0)),
        ),
        compiler_params=pltpu.CompilerParams(
            dimension_semantics=("parallel",),             # megacore split on v7x
        ),
        cost_estimate=pl.CostEstimate(
            flops=flops, transcendentals=0, bytes_accessed=bytes_accessed),
    )(x, w1, b1, w2, b2, w3, b3)


def init_params(key):
    """Deterministic init mimicking PyTorch Linear default (U[-1/sqrt(fan_in), +])."""
    dims = [(IN_FEATURES, H1), (H1, H2), (H2, OUT_FEATURES)]
    params = {}
    for i, (fan_in, fan_out) in enumerate(dims, start=1):
        key, kw, kb = jax.random.split(key, 3)
        bound = 1.0 / jnp.sqrt(float(fan_in))
        # stored pre-transposed: (in_features, out_features)
        params[f"w{i}"] = jax.random.uniform(
            kw, (fan_in, fan_out), jnp.float32, minval=-bound, maxval=bound)
        params[f"b{i}"] = jax.random.uniform(
            kb, (1, fan_out), jnp.float32, minval=-bound, maxval=bound)
    return params


def mlp_reference(x, params):
    h = jnp.maximum(x @ params["w1"] + params["b1"], 0.0)
    h = jnp.maximum(h @ params["w2"] + params["b2"], 0.0)
    return h @ params["w3"] + params["b3"]


if __name__ == "__main__":
    key = jax.random.PRNGKey(0)
    key, kx = jax.random.split(key)

    batch = 256                      # demo batch; tb capped to 128 -> grid=(2,)
    x = jax.random.normal(kx, (batch, IN_FEATURES), jnp.float32)
    params = init_params(key)

    out = mlp_forward(x, params)
    out = jax.block_until_ready(out)

    ref = mlp_reference(x, params)
    assert out.shape == (batch, OUT_FEATURES)
    assert jnp.allclose(out, ref, atol=1e-5, rtol=1e-5)

    print("KERNEL_OK")
</pallas_src>

<mosaic_0001>
module attributes {stable_mosaic.version = 11 : i64} {
  func.func @mlp_kernel(%arg0: i32, %arg1: memref<128x24xf32, #tpu.memory_space<vmem>>, %arg2: memref<24x24xf32, #tpu.memory_space<vmem>>, %arg3: memref<1x24xf32, #tpu.memory_space<vmem>>, %arg4: memref<24x14xf32, #tpu.memory_space<vmem>>, %arg5: memref<1x14xf32, #tpu.memory_space<vmem>>, %arg6: memref<14x8xf32, #tpu.memory_space<vmem>>, %arg7: memref<1x8xf32, #tpu.memory_space<vmem>>, %arg8: memref<128x8xf32, #tpu.memory_space<vmem>>) attributes {dimension_semantics = [#tpu.dimension_semantics<parallel>], iteration_bounds = array<i64: 2>, scalar_prefetch = 0 : i64, scratch_operands = 0 : i64, tpu.core_type = #tpu.core_type<tc>, window_params = [{transform_indices = @transform_0, window_bounds = array<i64: 128, 24>}, {pipeline_mode = #tpu.pipeline_mode<synchronous>, transform_indices = @transform_1, window_bounds = array<i64: 24, 24>}, {pipeline_mode = #tpu.pipeline_mode<synchronous>, transform_indices = @transform_2, window_bounds = array<i64: 1, 24>}, {pipeline_mode = #tpu.pipeline_mode<synchronous>, transform_indices = @transform_3, window_bounds = array<i64: 24, 14>}, {pipeline_mode = #tpu.pipeline_mode<synchronous>, transform_indices = @transform_4, window_bounds = array<i64: 1, 14>}, {pipeline_mode = #tpu.pipeline_mode<synchronous>, transform_indices = @transform_5, window_bounds = array<i64: 14, 8>}, {pipeline_mode = #tpu.pipeline_mode<synchronous>, transform_indices = @transform_6, window_bounds = array<i64: 1, 8>}, {transform_indices = @transform_7, window_bounds = array<i64: 128, 8>}]} {
    %c0 = arith.constant 0 : index
    %c0_0 = arith.constant 0 : index
    %0 = vector.load %arg1[%c0, %c0_0] : memref<128x24xf32, #tpu.memory_space<vmem>>, vector<128x24xf32>
    %c0_1 = arith.constant 0 : index
    %c0_2 = arith.constant 0 : index
    %1 = vector.load %arg2[%c0_1, %c0_2] : memref<24x24xf32, #tpu.memory_space<vmem>>, vector<24x24xf32>
    %cst = arith.constant dense<0.000000e+00> : vector<128x24xf32>
    %2 = tpu.matmul %0, %1, %cst {dimension_numbers = #tpu.dot_dimension_numbers<[1], [0], [0], [1], [0, 0, 1, 1], [], []>} : vector<128x24xf32>, vector<24x24xf32>, vector<128x24xf32> -> vector<128x24xf32>
    %c0_3 = arith.constant 0 : index
    %c0_4 = arith.constant 0 : index
    %3 = vector.load %arg3[%c0_3, %c0_4] : memref<1x24xf32, #tpu.memory_space<vmem>>, vector<1x24xf32>
    %4 = vector.broadcast %3 : vector<1x24xf32> to vector<128x24xf32>
    %5 = arith.addf %2, %4 : vector<128x24xf32>
    %cst_5 = arith.constant 0.000000e+00 : f32
    %6 = vector.broadcast %cst_5 : f32 to vector<128x24xf32>
    %7 = arith.maximumf %5, %6 : vector<128x24xf32>
    %c0_6 = arith.constant 0 : index
    %c0_7 = arith.constant 0 : index
    %8 = vector.load %arg4[%c0_6, %c0_7] : memref<24x14xf32, #tpu.memory_space<vmem>>, vector<24x14xf32>
    %cst_8 = arith.constant dense<0.000000e+00> : vector<128x14xf32>
    %9 = tpu.matmul %7, %8, %cst_8 {dimension_numbers = #tpu.dot_dimension_numbers<[1], [0], [0], [1], [0, 0, 1, 1], [], []>} : vector<128x24xf32>, vector<24x14xf32>, vector<128x14xf32> -> vector<128x14xf32>
    %c0_9 = arith.constant 0 : index
    %c0_10 = arith.constant 0 : index
    %10 = vector.load %arg5[%c0_9, %c0_10] : memref<1x14xf32, #tpu.memory_space<vmem>>, vector<1x14xf32>
    %11 = vector.broadcast %10 : vector<1x14xf32> to vector<128x14xf32>
    %12 = arith.addf %9, %11 : vector<128x14xf32>
    %cst_11 = arith.constant 0.000000e+00 : f32
    %13 = vector.broadcast %cst_11 : f32 to vector<128x14xf32>
    %14 = arith.maximumf %12, %13 : vector<128x14xf32>
    %c0_12 = arith.constant 0 : index
    %c0_13 = arith.constant 0 : index
    %15 = vector.load %arg6[%c0_12, %c0_13] : memref<14x8xf32, #tpu.memory_space<vmem>>, vector<14x8xf32>
    %cst_14 = arith.constant dense<0.000000e+00> : vector<128x8xf32>
    %16 = tpu.matmul %14, %15, %cst_14 {dimension_numbers = #tpu.dot_dimension_numbers<[1], [0], [0], [1], [0, 0, 1, 1], [], []>} : vector<128x14xf32>, vector<14x8xf32>, vector<128x8xf32> -> vector<128x8xf32>
    %c0_15 = arith.constant 0 : index
    %c0_16 = arith.constant 0 : index
    %17 = vector.load %arg7[%c0_15, %c0_16] : memref<1x8xf32, #tpu.memory_space<vmem>>, vector<1x8xf32>
    %18 = vector.broadcast %17 : vector<1x8xf32> to vector<128x8xf32>
    %19 = arith.addf %16, %18 : vector<128x8xf32>
    %c0_17 = arith.constant 0 : index
    %c0_18 = arith.constant 0 : index
    %20 = vector.load %arg8[%c0_17, %c0_18] : memref<128x8xf32, #tpu.memory_space<vmem>>, vector<128x8xf32>
    tpu.vector_store %arg8[%c0_17, %c0_18], %19 {strides = array<i32>} : memref<128x8xf32, #tpu.memory_space<vmem>>, vector<128x8xf32>,
    return
  }
  func.func @transform_0(%arg0: i32) -> (i32, i32) {
    %c0_i32 = arith.constant 0 : i32
    %c0_i32_0 = arith.constant 0 : i32
    return %arg0, %c0_i32 : i32, i32
  }
  func.func @transform_1(%arg0: i32) -> (i32, i32) {
    %c0_i32 = arith.constant 0 : i32
    %c0_i32_0 = arith.constant 0 : i32
    %c0_i32_1 = arith.constant 0 : i32
    return %c0_i32, %c0_i32_0 : i32, i32
  }
  func.func @transform_2(%arg0: i32) -> (i32, i32) {
    %c0_i32 = arith.constant 0 : i32
    %c0_i32_0 = arith.constant 0 : i32
    %c0_i32_1 = arith.constant 0 : i32
    return %c0_i32, %c0_i32_0 : i32, i32
  }
  func.func @transform_3(%arg0: i32) -> (i32, i32) {
    %c0_i32 = arith.constant 0 : i32
    %c0_i32_0 = arith.constant 0 : i32
    %c0_i32_1 = arith.constant 0 : i32
    return %c0_i32, %c0_i32_0 : i32, i32
  }
  func.func @transform_4(%arg0: i32) -> (i32, i32) {
    %c0_i32 = arith.constant 0 : i32
    %c0_i32_0 = arith.constant 0 : i32
    %c0_i32_1 = arith.constant 0 : i32
    return %c0_i32, %c0_i32_0 : i32, i32
  }
  func.func @transform_5(%arg0: i32) -> (i32, i32) {
    %c0_i32 = arith.constant 0 : i32
    %c0_i32_0 = arith.constant 0 : i32
    %c0_i32_1 = arith.constant 0 : i32
    return %c0_i32, %c0_i32_0 : i32, i32
  }
  func.func @transform_6(%arg0: i32) -> (i32, i32) {
    %c0_i32 = arith.constant 0 : i32
    %c0_i32_0 = arith.constant 0 : i32
    %c0_i32_1 = arith.constant 0 : i32
    return %c0_i32, %c0_i32_0 : i32, i32
  }
  func.func @transform_7(%arg0: i32) -> (i32, i32) {
    %c0_i32 = arith.constant 0 : i32
    %c0_i32_0 = arith.constant 0 : i32
    return %arg0, %c0_i32 : i32, i32
  }
}

</mosaic_0001>

<bundles_post_ra>
// kernel: mlp_forward.1
= control target key start
LH: loop header
LB: loop body
LE: loop exit
PB: predicated region body
PF: predicated region fallthrough
CT: control target
= control target key end

     0   :  { %s1286_s24 = smov 0   ;;  %s1443_s0 = inlined_call_operand.vmem [shape: f32[256,24], index: 0, kind: input, shape index: {}]   ;;  %s1444_s1 = inlined_call_operand.vmem [shape: f32[24,24], index: 1, kind: input, shape index: {}]   ;;  %s1445_s2 = inlined_call_operand.vmem [shape: f32[1,24], index: 2, kind: input, shape index: {}]   ;;  %s1446_s3 = inlined_call_operand.vmem [shape: f32[24,14], index: 3, kind: input, shape index: {}]   ;;  %s1447_s4 = inlined_call_operand.vmem [shape: f32[1,14], index: 4, kind: input, shape index: {}]   ;;  %s1448_s5 = inlined_call_operand.vmem [shape: f32[14,8], index: 5, kind: input, shape index: {}]   ;;  %s1449_s6 = inlined_call_operand.vmem [shape: f32[1,8], index: 6, kind: input, shape index: {}]   ;;  %s1450_s7 = inlined_call_operand.vmem [shape: f32[256,8], index: 7, kind: output, shape index: {}]  }
   0x1 LB: > { %s1017_s25 = sadd.s32 4294967295, %s1244_s24   ;;  %p1021_p0 = scmp.ge.s32.totalorder %s1244_s24, 1  ;;  %s1244_s24 = sphi %s1286_s24, %s17_s24  }
   0x2   : > { %p238_p1 = scmp.lt.s32.totalorder %s1244_s24, 3 }
   0x4   : > { %p239_p2 = pnand %p1021_p0, %p238_p1 }
   0x5   : > { %s1022_s30 = sshll.u32 (!%p239_p2), %s1017_s25, 4 }
   0x6   : > { %242 = sbr.rel (%p239_p2) target bundleno = 645 (0x285), region = 48  ;;  %p271_p3 = scmp.lt.s32.totalorder (!%p239_p2), %s1022_s30, 31 }
   0xb   : > { %v300_v0 = vld [vmem:[%s1444_s1 + $0x10] sm:$0xff]  ;;  %v299_v1 = vld [vmem:[%s1444_s1 + $0x8] sm:$0xff]  ;;  %v298_v2 = vld [vmem:[%s1444_s1] sm:$0xff]  ;;  %s1452_s30 = smov (!%p271_p3, %s1022_s30), 31  ;;  %vm308_vm0 = vcmask 195584   ;;  %vm795_vm1 = vcmask 1045504  }
   0xc   : > { %1136 = vmatprep.subr.mxu0 %v300_v0  ;;  %1224 = vmatprep.subr.mxu1 %v300_v0  ;;  %v520_v3 = vld [vmem:[%s1446_s3 + $0x10] sm:$0xff]  ;;  %s1023_s12 = sshll.u32 %s1452_s30, 3  ;;  %v519_v8 = vld [vmem:[%s1446_s3 + $0x8] sm:$0xff]  ;;  %v518_v21 = vld [vmem:[%s1446_s3] sm:$0xff]  ;;  %vm746_vm2 = vcmask 113664   ;;  %vm944_vm3 = vcmask 64512  }
   0xd   : > { %1137 = vmatpush3.msra.mxu0 %v300_v0  ;;  %1227 = vmatpush3.msra.mxu1 %v300_v0  ;;  %s1314_s15 = scalar_lea.vmem %s1443_s0, %s1023_s12  ;;  %v738_v22 = vld [vmem:[%s1448_s5 + $0x8] sm:$0x3f]  ;;  %v737_v23 = vld [vmem:[%s1448_s5] sm:$0xff]  ;;  %s1406_s11 = scalar_lea.vmem %s1450_s7, %s1023_s12 }
   0xe   : > { %1138 = vmatprep.subr.mxu0 %v299_v1  ;;  %1225 = vmatprep.subr.mxu1 %v299_v1  ;;  %v282_v4 = vld [vmem:[%s1314_s15] sm:$0xff]  ;;  %v283_v5 = vld [vmem:[%s1314_s15 + $0x8] sm:$0xff]  ;;  %v284_v6 = vld [vmem:[%s1314_s15 + $0x10] sm:$0xff] }
   0xf   : > { %1139 = vmatpush3.msra.mxu0 %v299_v1  ;;  %1228 = vmatpush3.msra.mxu1 %v299_v1  ;;  %v290_v7 = vld [vmem:[%s1314_s15 + $0x40] sm:$0xff]  ;;  %v285_v9 = vld [vmem:[%s1314_s15 + $0x18] sm:$0xff]  ;;  %v291_v10 = vld [vmem:[%s1314_s15 + $0x48] sm:$0xff] }
  0x10   : > { %1140 = vmatprep.subr.mxu0 %v298_v2  ;;  %1226 = vmatprep.subr.mxu1 %v298_v2  ;;  %v292_v11 = vld [vmem:[%s1314_s15 + $0x50] sm:$0xff]  ;;  %v286_v12 = vld [vmem:[%s1314_s15 + $0x20] sm:$0xff]  ;;  %v293_v13 = vld [vmem:[%s1314_s15 + $0x58] sm:$0xff] }
  0x11   : > { %1141 = vmatpush3.msra.mxu0 %v298_v2  ;;  %1229 = vmatpush3.msra.mxu1 %v298_v2  ;;  %v294_v14 = vld [vmem:[%s1314_s15 + $0x60] sm:$0xff]  ;;  %v287_v15 = vld [vmem:[%s1314_s15 + $0x28] sm:$0xff]  ;;  %v288_v16 = vld [vmem:[%s1314_s15 + $0x30] sm:$0xff] }
  0x12   : > { %1166 = vmatprep.subr.mxu1 %v520_v3  ;;  %1142 = vmatprep.mubr.msk.f32.mxu0 %vm308_vm0, %v282_v4  ;;  %v295_v17 = vld [vmem:[%s1314_s15 + $0x68] sm:$0xff]  ;;  %v296_v18 = vld [vmem:[%s1314_s15 + $0x70] sm:$0xff]  ;;  %v289_v19 = vld [vmem:[%s1314_s15 + $0x38] sm:$0xff] }
  0x13   : > { %1143 = vmatmul.mubr.msk.f32.vlgmr.msra.gmra.mxu0 %vm308_vm0, %v283_v5  ;;  %1154 = vmatprep.mubr.msk.f32.mxu1 %vm308_vm0, %v290_v7  ;;  %v297_v20 = vld [vmem:[%s1314_s15 + $0x78] sm:$0xff]  ;;  %v1026_v24 = vld [vmem:[%s1445_s2] ss:$0 sm:$0xff] }
  0x14   : > { %1145 = vmatprep.mubr.msk.f32.mxu0 %vm308_vm0, %v284_v6  ;;  %1155 = vmatmul.mubr.msk.f32.vlgmr.msra.gmra.mxu1 %vm308_vm0, %v291_v10 }
  0x15   : > { %1157 = vmatprep.mubr.msk.f32.mxu1 %vm308_vm0, %v292_v11  ;;  %1167 = vmatpush3.msra.mxu1 %v520_v3 }
  0x16   : > { %1168 = vmatprep.subr.mxu1 %v519_v8  ;;  %1196 = vmatprep.subr.msk.mxu0 %vm795_vm1, %v738_v22 }
  0x17   : > { %1146 = vmatmul.mubr.msk.f32.gmra.mxu0 %vm308_vm0, %v285_v9  ;;  %1169 = vmatpush3.msra.mxu1 %v519_v8  ;;  %v1043_v9 = vld [vmem:[%s1447_s4] ss:$0 sm:$0xff] }
  0x18   : > { %1148 = vmatprep.mubr.msk.f32.mxu0 %vm308_vm0, %v286_v12  ;;  %1158 = vmatmul.mubr.msk.f32.gmra.mxu1 %vm308_vm0, %v293_v13 }
  0x19   : > { %1160 = vmatprep.mubr.msk.f32.mxu1 %vm308_vm0, %v294_v14  ;;  %1170 = vmatprep.subr.mxu1 %v518_v21 }
  0x1a   : > { %1171 = vmatpush3.msra.mxu1 %v518_v21  ;;  %1197 = vmatpush3.msk.msra.mxu0 %vm795_vm1, %v738_v22 }
  0x1b   : > { %1149 = vmatmul.mubr.msk.f32.gmra.mxu0 %vm308_vm0, %v287_v15  ;;  %1198 = vmatprep.subr.mxu0 %v737_v23 }
  0x1c   : > { %1151 = vmatprep.mubr.msk.f32.mxu0 %vm308_vm0, %v288_v16  ;;  %1161 = vmatmul.mubr.msk.f32.gmra.mxu1 %vm308_vm0, %v295_v17 }
  0x1d   : > { %1163 = vmatprep.mubr.msk.f32.mxu1 %vm308_vm0, %v296_v18  ;;  %1199 = vmatpush3.msra.mxu0 %v737_v23 }
  0x1f   : > { %1152 = vmatmul.mubr.msk.f32.gmra.mxu0 %vm308_vm0, %v289_v19 }
  0x20   : > { %1164 = vmatmul.mubr.msk.f32.gmra.mxu1 %vm308_vm0, %v297_v20 }
  0xd3   : > { %v1144_v25 = vpop.f32.mrf.mxu0 }
  0xd4   : > { %v429_v26 = vadd.f32 %v1144_v25, %v1026_v24  ;;  %v1156_v28 = vpop.f32.mrf.mxu1 }
  0xd5   : > { %v423_v27 = vpop.f32.mrf.mxu0  ;;  %v469_v58 = vadd.f32 %v1156_v28, %v1026_v24 }
  0xd6   : > { %v424_v29 = vadd.f32 %v1026_v24, %v423_v27  ;;  %v463_v31 = vpop.f32.mrf.mxu1  ;;  %v503_v33 = vmax.f32 %v429_v26, 0.0 }
  0xd7   : > { %v1147_v30 = vpop.f32.mrf.mxu0  ;;  %v464_v48 = vadd.f32 %v1026_v24, %v463_v31  ;;  %v511_v62 = vmax.f32 %v469_v58, 0.0  ;;  %v1060_v58 = vld [vmem:[%s1449_s6] ss:$0 sm:$0xff] }
  0xd8   : > { %v502_v32 = vmax.f32 %v424_v29, 0.0  ;;  %v439_v34 = vadd.f32 %v1147_v30, %v1026_v24  ;;  %v1159_v36 = vpop.f32.mrf.mxu1 }
  0xd9   : > { %v433_v35 = vpop.f32.mrf.mxu0  ;;  %v510_v55 = vmax.f32 %v464_v48, 0.0  ;;  %v479_v63 = vadd.f32 %v1159_v36, %v1026_v24 }
  0xda   : > { %v434_v37 = vadd.f32 %v1026_v24, %v433_v35  ;;  %1172 = vmatprep.mubr.msk.f32.mxu1 %vm308_vm0, %v502_v32  ;;  %v473_v39 = vpop.f32.mrf.mxu1  ;;  %v505_v41 = vmax.f32 %v439_v34, 0.0 }
  0xdb   : > { %v1150_v38 = vpop.f32.mrf.mxu0  ;;  %1173 = vmatmul.mubr.msk.f32.vlgmr.msra.gmra.mxu1 %vm308_vm0, %v503_v33  ;;  %v474_v56 = vadd.f32 %v1026_v24, %v473_v39  ;;  %v513_v3 = vmax.f32 %v479_v63, 0.0 }
  0xdc   : > { %v504_v40 = vmax.f32 %v434_v37, 0.0  ;;  %v449_v42 = vadd.f32 %v1150_v38, %v1026_v24  ;;  %v1162_v44 = vpop.f32.mrf.mxu1 }
  0xdd   : > { %v443_v43 = vpop.f32.mrf.mxu0  ;;  %v512_v60 = vmax.f32 %v474_v56, 0.0  ;;  %v489_v4 = vadd.f32 %v1162_v44, %v1026_v24 }
  0xde   : > { %v444_v45 = vadd.f32 %v1026_v24, %v443_v43  ;;  %1175 = vmatprep.mubr.msk.f32.mxu1 %vm308_vm0, %v504_v40  ;;  %v507_v49 = vmax.f32 %v449_v42, 0.0  ;;  %v483_v52 = vpop.f32.mrf.mxu1 }
  0xdf   : > { %v1153_v46 = vpop.f32.mrf.mxu0  ;;  %1176 = vmatmul.mubr.msk.f32.gmra.mxu1 %vm308_vm0, %v505_v41  ;;  %v484_v61 = vadd.f32 %v1026_v24, %v483_v52  ;;  %v515_v6 = vmax.f32 %v489_v4, 0.0 }
  0xe0   : > { %v506_v47 = vmax.f32 %v444_v45, 0.0  ;;  %v459_v50 = vadd.f32 %v1153_v46, %v1026_v24  ;;  %v1165_v59 = vpop.f32.mrf.mxu1 }
  0xe1   : > { %v453_v51 = vpop.f32.mrf.mxu0  ;;  %v514_v1 = vmax.f32 %v484_v61, 0.0  ;;  %v499_v7 = vadd.f32 %v1165_v59, %v1026_v24 }
  0xe2   : > { %v454_v53 = vadd.f32 %v1026_v24, %v453_v51  ;;  %1178 = vmatprep.mubr.msk.f32.mxu1 %vm308_vm0, %v506_v47  ;;  %v509_v57 = vmax.f32 %v459_v50, 0.0  ;;  %v493_v0 = vpop.f32.mrf.mxu1 }
  0xe3   : > { %1179 = vmatmul.mubr.msk.f32.gmra.mxu1 %vm308_vm0, %v507_v49  ;;  %v494_v2 = vadd.f32 %v1026_v24, %v493_v0  ;;  %v517_v8 = vmax.f32 %v499_v7, 0.0 }
  0xe4   : > { %v508_v54 = vmax.f32 %v454_v53, 0.0 }
  0xe5   : > { %v516_v5 = vmax.f32 %v494_v2, 0.0 }
  0xe6   : > { %1181 = vmatprep.mubr.msk.f32.mxu1 %vm308_vm0, %v508_v54 }
  0xe7   : > { %1182 = vmatmul.mubr.msk.f32.gmra.mxu1 %vm308_vm0, %v509_v57 }
  0xe8   : > { %1184 = vmatprep.mubr.msk.f32.mxu1 %vm308_vm0, %v510_v55 }
  0xeb   : > { %1185 = vmatmul.mubr.msk.f32.gmra.mxu1 %vm308_vm0, %v511_v62 }
  0xec   : > { %1187 = vmatprep.mubr.msk.f32.mxu1 %vm308_vm0, %v512_v60 }
  0xef   : > { %1188 = vmatmul.mubr.msk.f32.gmra.mxu1 %vm308_vm0, %v513_v3 }
  0xf0   : > { %1190 = vmatprep.mubr.msk.f32.mxu1 %vm308_vm0, %v514_v1 }
  0xf3   : > { %1191 = vmatmul.mubr.msk.f32.gmra.mxu1 %vm308_vm0, %v515_v6 }
  0xf4   : > { %1193 = vmatprep.mubr.msk.f32.mxu1 %vm308_vm0, %v516_v5 }
  0xf7   : > { %1194 = vmatmul.mubr.msk.f32.gmra.mxu1 %vm308_vm0, %v517_v8 }
 0x19b   : > { %v1174_v10 = vpop.f32.mrf.mxu1 }
 0x19c   : > { %v648_v11 = vadd.f32 %v1174_v10, %v1043_v9 }
 0x19d   : > { %v642_v12 = vpop.f32.mrf.mxu1 }
 0x19e   : > { %v643_v13 = vadd.f32 %v1043_v9, %v642_v12  ;;  %v722_v16 = vmax.f32 %v648_v11, 0.0 }
 0x19f   : > { %v1177_v14 = vpop.f32.mrf.mxu1 }
 0x1a0   : > { %v721_v15 = vmax.f32 %v643_v13, 0.0  ;;  %v658_v17 = vadd.f32 %v1177_v14, %v1043_v9 }
 0x1a1   : > { %v652_v18 = vpop.f32.mrf.mxu1 }
 0x1a2   : > { %v653_v19 = vadd.f32 %v1043_v9, %v652_v18  ;;  %1200 = vmatprep.mubr.msk.f32.mxu0 %vm746_vm2, %v721_v15  ;;  %v724_v22 = vmax.f32 %v658_v17, 0.0 }
 0x1a3   : > { %v1180_v20 = vpop.f32.mrf.mxu1  ;;  %1201 = vmatmul.mubr.msk.f32.vlgmr.msra.gmra.mxu0 %vm746_vm2, %v722_v16 }
 0x1a4   : > { %v723_v21 = vmax.f32 %v653_v19, 0.0  ;;  %v668_v23 = vadd.f32 %v1180_v20, %v1043_v9 }
 0x1a5   : > { %v662_v24 = vpop.f32.mrf.mxu1 }
 0x1a6   : > { %v663_v25 = vadd.f32 %v1043_v9, %v662_v24  ;;  %1203 = vmatprep.mubr.msk.f32.mxu0 %vm746_vm2, %v723_v21  ;;  %v726_v28 = vmax.f32 %v668_v23, 0.0 }
 0x1a7   : > { %v1183_v26 = vpop.f32.mrf.mxu1  ;;  %1204 = vmatmul.mubr.msk.f32.gmra.mxu0 %vm746_vm2, %v724_v22 }
 0x1a8   : > { %v725_v27 = vmax.f32 %v663_v25, 0.0  ;;  %v678_v29 = vadd.f32 %v1183_v26, %v1043_v9 }
 0x1a9   : > { %v672_v30 = vpop.f32.mrf.mxu1 }
 0x1aa   : > { %v673_v31 = vadd.f32 %v1043_v9, %v672_v30  ;;  %1206 = vmatprep.mubr.msk.f32.mxu0 %vm746_vm2, %v725_v27  ;;  %v728_v34 = vmax.f32 %v678_v29, 0.0 }
 0x1ab   : > { %v1186_v32 = vpop.f32.mrf.mxu1  ;;  %1207 = vmatmul.mubr.msk.f32.gmra.mxu0 %vm746_vm2, %v726_v28 }
 0x1ac   : > { %v727_v33 = vmax.f32 %v673_v31, 0.0  ;;  %v688_v35 = vadd.f32 %v1186_v32, %v1043_v9 }
 0x1ad   : > { %v682_v36 = vpop.f32.mrf.mxu1 }
 0x1ae   : > { %v683_v37 = vadd.f32 %v1043_v9, %v682_v36  ;;  %1209 = vmatprep.mubr.msk.f32.mxu0 %vm746_vm2, %v727_v33  ;;  %v730_v40 = vmax.f32 %v688_v35, 0.0 }
 0x1af   : > { %v1189_v38 = vpop.f32.mrf.mxu1  ;;  %1210 = vmatmul.mubr.msk.f32.gmra.mxu0 %vm746_vm2, %v728_v34 }
 0x1b0   : > { %v729_v39 = vmax.f32 %v683_v37, 0.0  ;;  %v698_v41 = vadd.f32 %v1189_v38, %v1043_v9 }
 0x1b1   : > { %v692_v42 = vpop.f32.mrf.mxu1 }
 0x1b2   : > { %v693_v43 = vadd.f32 %v1043_v9, %v692_v42  ;;  %1212 = vmatprep.mubr.msk.f32.mxu0 %vm746_vm2, %v729_v39  ;;  %v732_v46 = vmax.f32 %v698_v41, 0.0 }
 0x1b3   : > { %v1192_v44 = vpop.f32.mrf.mxu1  ;;  %1213 = vmatmul.mubr.msk.f32.gmra.mxu0 %vm746_vm2, %v730_v40 }
 0x1b4   : > { %v731_v45 = vmax.f32 %v693_v43, 0.0  ;;  %v708_v47 = vadd.f32 %v1192_v44, %v1043_v9 }
 0x1b5   : > { %v702_v48 = vpop.f32.mrf.mxu1 }
 0x1b6   : > { %v703_v49 = vadd.f32 %v1043_v9, %v702_v48  ;;  %1215 = vmatprep.mubr.msk.f32.mxu0 %vm746_vm2, %v731_v45  ;;  %v734_v52 = vmax.f32 %v708_v47, 0.0 }
 0x1b7   : > { %v1195_v50 = vpop.f32.mrf.mxu1  ;;  %1216 = vmatmul.mubr.msk.f32.gmra.mxu0 %vm746_vm2, %v732_v46 }
 0x1b8   : > { %v733_v51 = vmax.f32 %v703_v49, 0.0  ;;  %v718_v53 = vadd.f32 %v1195_v50, %v1043_v9 }
 0x1b9   : > { %v712_v54 = vpop.f32.mrf.mxu1 }
 0x1ba   : > { %v713_v55 = vadd.f32 %v1043_v9, %v712_v54  ;;  %1218 = vmatprep.mubr.msk.f32.mxu0 %vm746_vm2, %v733_v51  ;;  %v736_v57 = vmax.f32 %v718_v53, 0.0 }
 0x1bb   : > { %1219 = vmatmul.mubr.msk.f32.gmra.mxu0 %vm746_vm2, %v734_v52 }
 0x1bc   : > { %v735_v56 = vmax.f32 %v713_v55, 0.0 }
 0x1be   : > { %1221 = vmatprep.mubr.msk.f32.mxu0 %vm746_vm2, %v735_v56 }
 0x1bf   : > { %1222 = vmatmul.mubr.msk.f32.gmra.mxu0 %vm746_vm2, %v736_v57 }
 0x263   : > { %v1202_v59 = vpop.f32.mrf.mxu0 }
 0x264   : > { %v871_v60 = vadd.f32 %v1202_v59, %v1060_v58 }
 0x265   : > { %v865_v61 = vpop.f32.mrf.mxu0 }
 0x266   : > { %946 = vst.msk [vmem:[%s1406_s11 + $0x8] sm:$0xff] %vm944_vm3, %v871_v60  ;;  %v866_v62 = vadd.f32 %v1060_v58, %v865_v61 }
 0x267   : > { %v1205_v63 = vpop.f32.mrf.mxu0 }
 0x268   : > { %945 = vst.msk [vmem:[%s1406_s11] sm:$0xff] %vm944_vm3, %v866_v62  ;;  %v881_v0 = vadd.f32 %v1205_v63, %v1060_v58 }
 0x269   : > { %v875_v1 = vpop.f32.mrf.mxu0 }
 0x26a   : > { %948 = vst.msk [vmem:[%s1406_s11 + $0x18] sm:$0xff] %vm944_vm3, %v881_v0  ;;  %v876_v2 = vadd.f32 %v1060_v58, %v875_v1 }
 0x26b   : > { %v1208_v3 = vpop.f32.mrf.mxu0 }
 0x26c   : > { %947 = vst.msk [vmem:[%s1406_s11 + $0x10] sm:$0xff] %vm944_vm3, %v876_v2  ;;  %v891_v4 = vadd.f32 %v1208_v3, %v1060_v58 }
 0x26d   : > { %v885_v5 = vpop.f32.mrf.mxu0 }
 0x26e   : > { %950 = vst.msk [vmem:[%s1406_s11 + $0x28] sm:$0xff] %vm944_vm3, %v891_v4  ;;  %v886_v6 = vadd.f32 %v1060_v58, %v885_v5 }
 0x26f   : > { %v1211_v7 = vpop.f32.mrf.mxu0 }
 0x270   : > { %949 = vst.msk [vmem:[%s1406_s11 + $0x20] sm:$0xff] %vm944_vm3, %v886_v6  ;;  %v901_v8 = vadd.f32 %v1211_v7, %v1060_v58 }
 0x271   : > { %v895_v9 = vpop.f32.mrf.mxu0 }
 0x272   : > { %952 = vst.msk [vmem:[%s1406_s11 + $0x38] sm:$0xff] %vm944_vm3, %v901_v8  ;;  %v896_v10 = vadd.f32 %v1060_v58, %v895_v9 }
 0x273   : > { %v1214_v11 = vpop.f32.mrf.mxu0 }
 0x274   : > { %951 = vst.msk [vmem:[%s1406_s11 + $0x30] sm:$0xff] %vm944_vm3, %v896_v10  ;;  %v911_v12 = vadd.f32 %v1214_v11, %v1060_v58 }
 0x275   : > { %v905_v13 = vpop.f32.mrf.mxu0 }
 0x276   : > { %954 = vst.msk [vmem:[%s1406_s11 + $0x48] sm:$0xff] %vm944_vm3, %v911_v12  ;;  %v906_v14 = vadd.f32 %v1060_v58, %v905_v13 }
 0x277   : > { %v1217_v15 = vpop.f32.mrf.mxu0 }
 0x278   : > { %953 = vst.msk [vmem:[%s1406_s11 + $0x40] sm:$0xff] %vm944_vm3, %v906_v14  ;;  %v921_v16 = vadd.f32 %v1217_v15, %v1060_v58 }
 0x279   : > { %v915_v17 = vpop.f32.mrf.mxu0 }
 0x27a   : > { %956 = vst.msk [vmem:[%s1406_s11 + $0x58] sm:$0xff] %vm944_vm3, %v921_v16  ;;  %v916_v18 = vadd.f32 %v1060_v58, %v915_v17 }
 0x27b   : > { %v1220_v19 = vpop.f32.mrf.mxu0 }
 0x27c   : > { %955 = vst.msk [vmem:[%s1406_s11 + $0x50] sm:$0xff] %vm944_vm3, %v916_v18  ;;  %v931_v20 = vadd.f32 %v1220_v19, %v1060_v58 }
 0x27d   : > { %v925_v21 = vpop.f32.mrf.mxu0 }
 0x27e   : > { %958 = vst.msk [vmem:[%s1406_s11 + $0x68] sm:$0xff] %vm944_vm3, %v931_v20  ;;  %v926_v22 = vadd.f32 %v1060_v58, %v925_v21 }
 0x27f   : > { %v1223_v23 = vpop.f32.mrf.mxu0 }
 0x280   : > { %957 = vst.msk [vmem:[%s1406_s11 + $0x60] sm:$0xff] %vm944_vm3, %v926_v22  ;;  %v941_v24 = vadd.f32 %v1223_v23, %v1060_v58 }
 0x281   : > { %v935_v25 = vpop.f32.mrf.mxu0 }
 0x282   : > { %960 = vst.msk [vmem:[%s1406_s11 + $0x78] sm:$0xff] %vm944_vm3, %v941_v24  ;;  %v936_v26 = vadd.f32 %v1060_v58, %v935_v25 }
 0x284   : > { %959 = vst.msk [vmem:[%s1406_s11 + $0x70] sm:$0xff] %vm944_vm3, %v936_v26 }
 0x285 PF: > { %s17_s24 = sadd.s32 1, %s1244_s24  }
 0x286   : > { %p14_p4 = scmp.ge.s32.totalorder %s17_s24, 4  }
 0x288   :  { %16 = sbr.rel (!%p14_p4) target bundleno = 1 (0x1), region = 78 }

</bundles_post_ra>
